<compile_context>
chip_gen: v7x
topology: tpu7x:2x2x1
jax: 0.10.0
libtpu: 0.0.40
codegen_flags: <defaults>
</compile_context>

<pallas_src>
import jax
import jax.numpy as jnp
from jax.experimental import pallas as pl
from jax.experimental.pallas import tpu as pltpu


def _pick_tile(n, candidates=(512, 256, 128)):
    """Largest tile that keeps blocks VMEM-friendly and (8,128)-legal."""
    if n <= candidates[0]:
        return n
    for c in candidates:
        if n % c == 0:
            return c
    return n


def _biaffine_body(x1_ref, x2_ref, wt_ref, bc_ref, wl_ref, bl_ref,
                   out_ref, affine_s, alast_s):
    # x1_ref: (1, t1, D1)      x2_ref: (1, t2, D2)
    # wt_ref: (D1, O*D2)       bc_ref: (1, O*D2)
    # wl_ref: (O, D1) | None   bl_ref: (O, 1) | None
    # out_ref: (1, O, t2, t1)
    # affine_s: VMEM (t1, O*D2)   alast_s: VMEM (O, t1) | None
    bias1 = wl_ref is not None
    n_out = out_ref.shape[1]
    d2 = x2_ref.shape[-1]

    # Recompute the fused affine only when the L2-tile sweep restarts.
    @pl.when(pl.program_id(2) == 0)
    def _compute_affine():
        x1 = x1_ref[0]                                     # (t1, D1)
        # Single fused MXU matmul across all O heads (plain (M,K)@(K,N)).
        aff = jnp.dot(x1, wt_ref[...], preferred_element_type=jnp.float32)
        affine_s[...] = aff + bc_ref[...]                  # bias[0] rank-1 term
        if bias1:
            # Contribution of x2's implicit ones column, kept transposed (O,t1)
            al = jax.lax.dot_general(
                wl_ref[...], x1, (((1,), (1,)), ((), ())),
                preferred_element_type=jnp.float32)
            alast_s[...] = al + bl_ref[...]

    x2 = x2_ref[0]                                         # (t2, D2)
    affine = affine_s[...]                                 # (t1, O*D2)
    if bias1:
        alast = alast_s[...]                               # (O, t1)

    for o in range(n_out):                                 # static, small loop
        aff_o = affine[:, o * d2:(o + 1) * d2]             # (t1, D2)
        # out_o[l2, l1] = sum_d2 x2[l2, d2] * aff_o[l1, d2]
        out_o = jax.lax.dot_general(
            x2, aff_o, (((1,), (1,)), ((), ())),
            preferred_element_type=jnp.float32)            # (t2, t1)
        if bias1:
            out_o = out_o + alast[o:o + 1, :]              # broadcast over l2
        out_ref[0, o] = out_o.astype(out_ref.dtype)


def _make_kernel(bias1):
    if bias1:
        def kernel(x1_ref, x2_ref, wt_ref, bc_ref, wl_ref, bl_ref,
                   out_ref, affine_s, alast_s):
            _biaffine_body(x1_ref, x2_ref, wt_ref, bc_ref, wl_ref, bl_ref,
                           out_ref, affine_s, alast_s)
    else:
        def kernel(x1_ref, x2_ref, wt_ref, bc_ref, out_ref, affine_s):
            _biaffine_body(x1_ref, x2_ref, wt_ref, bc_ref, None, None,
                           out_ref, affine_s, None)
    return kernel


def biaffine_forward(input1, input2, weight, out_features, bias=(True, True)):
    """Pallas implementation of Biaffine.forward.

    input1: (B, L1, D1) f32;  input2: (B, L2, D2) f32
    weight: (out_features*(D2+bias1), D1+bias0)  -- PyTorch Linear weight.
    returns (B, L2, L1, out_features) f32.
    """
    B, L1, D1 = input1.shape
    B2, L2, D2 = input2.shape
    assert B == B2
    O = out_features
    D1p = D1 + int(bias[0])
    D2p = D2 + int(bias[1])
    assert weight.shape == (O * D2p, D1p), weight.shape

    # ---- wrapper-side weight decomposition (one-time, plain XLA) -----------
    w3 = weight.reshape(O, D2p, D1p)
    # Core weight pre-transposed to (D1, O*D2): columns ordered (o, d2).
    wt_core = jnp.transpose(w3[:, :D2, :D1], (2, 0, 1)).reshape(D1, O * D2)
    if bias[0]:
        b_core = w3[:, :D2, D1].reshape(1, O * D2)
    else:
        b_core = jnp.zeros((1, O * D2), dtype=weight.dtype)

    extra_inputs, extra_specs = [], []
    if bias[1]:
        w_last = w3[:, D2, :D1]                                   # (O, D1)
        if bias[0]:
            b_last = w3[:, D2, D1].reshape(O, 1)
        else:
            b_last = jnp.zeros((O, 1), dtype=weight.dtype)
        extra_inputs = [w_last, b_last]
        extra_specs = [pl.BlockSpec((O, D1), lambda b, i1, i2: (0, 0)),
                       pl.BlockSpec((O, 1), lambda b, i1, i2: (0, 0))]

    # ---- tiling --------------------------------------------------------------
    t1 = _pick_tile(L1)      # lane dim of output block: 128-multiple or full
    t2 = _pick_tile(L2)
    n1 = L1 // t1
    n2 = L2 // t2

    in_specs = [
        pl.BlockSpec((1, t1, D1), lambda b, i1, i2: (b, i1, 0)),
        pl.BlockSpec((1, t2, D2), lambda b, i1, i2: (b, i2, 0)),
        pl.BlockSpec((D1, O * D2), lambda b, i1, i2: (0, 0)),
        pl.BlockSpec((1, O * D2), lambda b, i1, i2: (0, 0)),
    ] + extra_specs

    scratch = [pltpu.VMEM((t1, O * D2), jnp.float32)]
    if bias[1]:
        scratch.append(pltpu.VMEM((O, t1), jnp.float32))

    out_bol2l1 = pl.pallas_call(
        _make_kernel(bias[1]),
        out_shape=jax.ShapeDtypeStruct((B, O, L2, L1), jnp.float32),
        grid_spec=pltpu.PrefetchScalarGridSpec(
            num_scalar_prefetch=0,
            grid=(B, n1, n2),
            in_specs=in_specs,
            out_specs=pl.BlockSpec((1, O, t2, t1),
                                   lambda b, i1, i2: (b, 0, i2, i1)),
            scratch_shapes=scratch,
        ),
        compiler_params=pltpu.CompilerParams(
            dimension_semantics=("parallel", "parallel", "arbitrary")),
    )(input1, input2, wt_core, b_core, *extra_inputs)

    # TODO(synk): the final (B,O,L2,L1)->(B,L2,L1,O) permute is left to XLA;
    # emitting (B,L2,L1*O) lane-dense directly requires an in-kernel
    # (L1, O*D2)->(L1*O, D2) relayout that Mosaic reshape support does not
    # reliably cover. bf16 MXU operands (with f32 accumulation) also left out
    # to keep bit-for-bit f32 semantics.
    return jnp.transpose(out_bol2l1, (0, 2, 3, 1))


def biaffine_reference(input1, input2, weight, out_features, bias=(True, True)):
    """Pure-JAX reference mirroring the PyTorch code exactly."""
    B, L1, D1 = input1.shape
    _, L2, D2 = input2.shape
    if bias[0]:
        input1 = jnp.concatenate(
            [input1, jnp.ones((B, L1, 1), input1.dtype)], axis=2)
        D1 += 1
    if bias[1]:
        input2 = jnp.concatenate(
            [input2, jnp.ones((B, L2, 1), input2.dtype)], axis=2)
        D2 += 1
    affine = jnp.einsum("bld,od->blo", input1, weight)          # Linear, no bias
    affine = affine.reshape(B, L1 * out_features, D2)
    biaff = jnp.einsum("bmd,bnd->bmn", affine, input2)          # bmm with x2^T
    biaff = jnp.transpose(biaff, (0, 2, 1))
    return biaff.reshape(B, L2, L1, out_features)


def _run_case(key, B, L1, L2, d1, d2, out_features, bias=(True, True)):
    k1, k2, kw = jax.random.split(key, 3)
    input1 = jax.random.normal(k1, (B, L1, d1), dtype=jnp.float32)
    input2 = jax.random.normal(k2, (B, L2, d2), dtype=jnp.float32)
    linear_in = d1 + int(bias[0])
    linear_out = out_features * (d2 + int(bias[1]))
    weight = 0.1 * jax.random.normal(kw, (linear_out, linear_in),
                                     dtype=jnp.float32)
    out = jax.block_until_ready(
        biaffine_forward(input1, input2, weight, out_features, bias))
    ref = biaffine_reference(input1, input2, weight, out_features, bias)
    assert out.shape == (B, L2, L1, out_features), out.shape
    err = float(jnp.max(jnp.abs(out - ref)))
    assert jnp.allclose(out, ref, atol=1e-3, rtol=1e-4), err
    return out


if __name__ == "__main__":
    key = jax.random.PRNGKey(0)
    k_small, k_big = jax.random.split(key)

    # Small case consistent with the module's intended use.
    _run_case(k_small, B=2, L1=8, L2=8, d1=32, d2=32, out_features=4)

    # Larger case exercising the L1/L2 tiling + scratch-staged affine path.
    _run_case(k_big, B=2, L1=640, L2=640, d1=32, d2=32, out_features=4)

    print("KERNEL_OK")
</pallas_src>

<mosaic_0001>
module attributes {stable_mosaic.version = 11 : i64} {
  func.func @kernel(%arg0: i32, %arg1: i32, %arg2: i32, %arg3: memref<1x8x32xf32, #tpu.memory_space<vmem>>, %arg4: memref<1x8x32xf32, #tpu.memory_space<vmem>>, %arg5: memref<32x128xf32, #tpu.memory_space<vmem>>, %arg6: memref<1x128xf32, #tpu.memory_space<vmem>>, %arg7: memref<4x32xf32, #tpu.memory_space<vmem>>, %arg8: memref<4x1xf32, #tpu.memory_space<vmem>>, %arg9: memref<1x4x8x8xf32, #tpu.memory_space<vmem>>, %arg10: memref<8x128xf32, #tpu.memory_space<vmem>>, %arg11: memref<4x8xf32, #tpu.memory_space<vmem>>) attributes {dimension_semantics = [#tpu.dimension_semantics<parallel>, #tpu.dimension_semantics<parallel>, #tpu.dimension_semantics<arbitrary>], iteration_bounds = array<i64: 2, 1, 1>, scalar_prefetch = 0 : i64, scratch_operands = 2 : i64, tpu.core_type = #tpu.core_type<tc>, window_params = [{transform_indices = @transform_0, window_bounds = array<i64: 1, 8, 32>}, {transform_indices = @transform_1, window_bounds = array<i64: 1, 8, 32>}, {pipeline_mode = #tpu.pipeline_mode<synchronous>, transform_indices = @transform_2, window_bounds = array<i64: 32, 128>}, {pipeline_mode = #tpu.pipeline_mode<synchronous>, transform_indices = @transform_3, window_bounds = array<i64: 1, 128>}, {pipeline_mode = #tpu.pipeline_mode<synchronous>, transform_indices = @transform_4, window_bounds = array<i64: 4, 32>}, {pipeline_mode = #tpu.pipeline_mode<synchronous>, transform_indices = @transform_5, window_bounds = array<i64: 4, 1>}, {transform_indices = @transform_6, window_bounds = array<i64: 1, 4, 8, 8>}]} {
    %c0_i32 = arith.constant 0 : i32
    %0 = arith.cmpi eq, %arg2, %c0_i32 : i32
    %1 = arith.extui %0 : i1 to i32
    %c0_i32_0 = arith.constant 0 : i32
    %2 = arith.cmpi ne, %1, %c0_i32_0 : i32
    scf.if %2 {
      %c0_23 = arith.constant 0 : index
      %c0_24 = arith.constant 0 : index
      %c0_25 = arith.constant 0 : index
      %39 = vector.load %arg3[%c0_23, %c0_24, %c0_25] : memref<1x8x32xf32, #tpu.memory_space<vmem>>, vector<1x8x32xf32>
      %40 = vector.shape_cast %39 : vector<1x8x32xf32> to vector<8x32xf32>
      %c0_26 = arith.constant 0 : index
      %c0_27 = arith.constant 0 : index
      %41 = vector.load %arg5[%c0_26, %c0_27] : memref<32x128xf32, #tpu.memory_space<vmem>>, vector<32x128xf32>
      %cst_28 = arith.constant dense<0.000000e+00> : vector<8x128xf32>
      %42 = tpu.matmul %40, %41, %cst_28 {dimension_numbers = #tpu.dot_dimension_numbers<[1], [0], [0], [1], [0, 0, 1, 1], [], []>} : vector<8x32xf32>, vector<32x128xf32>, vector<8x128xf32> -> vector<8x128xf32>
      %c0_29 = arith.constant 0 : index
      %c0_30 = arith.constant 0 : index
      %43 = vector.load %arg6[%c0_29, %c0_30] : memref<1x128xf32, #tpu.memory_space<vmem>>, vector<1x128xf32>
      %44 = vector.broadcast %43 : vector<1x128xf32> to vector<8x128xf32>
      %45 = arith.addf %42, %44 : vector<8x128xf32>
      %c0_31 = arith.constant 0 : index
      %c0_32 = arith.constant 0 : index
      %46 = vector.load %arg10[%c0_31, %c0_32] : memref<8x128xf32, #tpu.memory_space<vmem>>, vector<8x128xf32>
      tpu.vector_store %arg10[%c0_31, %c0_32], %45 {strides = array<i32>} : memref<8x128xf32, #tpu.memory_space<vmem>>, vector<8x128xf32>,
      %c0_33 = arith.constant 0 : index
      %c0_34 = arith.constant 0 : index
      %47 = vector.load %arg7[%c0_33, %c0_34] : memref<4x32xf32, #tpu.memory_space<vmem>>, vector<4x32xf32>
      %cst_35 = arith.constant dense<0.000000e+00> : vector<4x8xf32>
      %48 = tpu.matmul %47, %40, %cst_35 {dimension_numbers = #tpu.dot_dimension_numbers<[1], [1], [0], [0], [0, 0, 1, 0], [], []>} : vector<4x32xf32>, vector<8x32xf32>, vector<4x8xf32> -> vector<4x8xf32>
      %c0_36 = arith.constant 0 : index
      %c0_37 = arith.constant 0 : index
      %49 = vector.load %arg8[%c0_36, %c0_37] : memref<4x1xf32, #tpu.memory_space<vmem>>, vector<4x1xf32>
      %50 = vector.broadcast %49 : vector<4x1xf32> to vector<4x8xf32>
      %51 = arith.addf %48, %50 : vector<4x8xf32>
      %c0_38 = arith.constant 0 : index
      %c0_39 = arith.constant 0 : index
      %52 = vector.load %arg11[%c0_38, %c0_39] : memref<4x8xf32, #tpu.memory_space<vmem>>, vector<4x8xf32>
      tpu.vector_store %arg11[%c0_38, %c0_39], %51 {strides = array<i32>} : memref<4x8xf32, #tpu.memory_space<vmem>>, vector<4x8xf32>,
    } else {
    }
    %c0 = arith.constant 0 : index
    %c0_1 = arith.constant 0 : index
    %c0_2 = arith.constant 0 : index
    %3 = vector.load %arg4[%c0, %c0_1, %c0_2] : memref<1x8x32xf32, #tpu.memory_space<vmem>>, vector<1x8x32xf32>
    %4 = vector.shape_cast %3 : vector<1x8x32xf32> to vector<8x32xf32>
    %c0_3 = arith.constant 0 : index
    %c0_4 = arith.constant 0 : index
    %5 = vector.load %arg10[%c0_3, %c0_4] : memref<8x128xf32, #tpu.memory_space<vmem>>, vector<8x128xf32>
    %c0_5 = arith.constant 0 : index
    %c0_6 = arith.constant 0 : index
    %6 = vector.load %arg11[%c0_5, %c0_6] : memref<4x8xf32, #tpu.memory_space<vmem>>, vector<4x8xf32>
    %7 = vector.extract_strided_slice %5 {offsets = [0, 0], sizes = [8, 32], strides = [1, 1]} : vector<8x128xf32> to vector<8x32xf32>
    %cst = arith.constant dense<0.000000e+00> : vector<8x8xf32>
    %8 = tpu.matmul %4, %7, %cst {dimension_numbers = #tpu.dot_dimension_numbers<[1], [1], [0], [0], [0, 0, 1, 0], [], []>} : vector<8x32xf32>, vector<8x32xf32>, vector<8x8xf32> -> vector<8x8xf32>
    %9 = vector.extract_strided_slice %6 {offsets = [0, 0], sizes = [1, 8], strides = [1, 1]} : vector<4x8xf32> to vector<1x8xf32>
    %10 = vector.broadcast %9 : vector<1x8xf32> to vector<8x8xf32>
    %11 = arith.addf %8, %10 : vector<8x8xf32>
    %c0_7 = arith.constant 0 : index
    %c0_8 = arith.constant 0 : index
    %c0_9 = arith.constant 0 : index
    %c0_10 = arith.constant 0 : index
    %12 = vector.load %arg9[%c0_7, %c0_8, %c0_9, %c0_10] : memref<1x4x8x8xf32, #tpu.memory_space<vmem>>, vector<1x1x8x8xf32>
    %13 = vector.shape_cast %12 : vector<1x1x8x8xf32> to vector<8x8xf32>
    %14 = vector.shape_cast %11 : vector<8x8xf32> to vector<1x1x8x8xf32>
    tpu.vector_store %arg9[%c0_7, %c0_8, %c0_9, %c0_10], %14 {strides = array<i32>} : memref<1x4x8x8xf32, #tpu.memory_space<vmem>>, vector<1x1x8x8xf32>,
    %15 = vector.extract_strided_slice %5 {offsets = [0, 32], sizes = [8, 32], strides = [1, 1]} : vector<8x128xf32> to vector<8x32xf32>
    %cst_11 = arith.constant dense<0.000000e+00> : vector<8x8xf32>
    %16 = tpu.matmul %4, %15, %cst_11 {dimension_numbers = #tpu.dot_dimension_numbers<[1], [1], [0], [0], [0, 0, 1, 0], [], []>} : vector<8x32xf32>, vector<8x32xf32>, vector<8x8xf32> -> vector<8x8xf32>
    %17 = vector.extract_strided_slice %6 {offsets = [1, 0], sizes = [1, 8], strides = [1, 1]} : vector<4x8xf32> to vector<1x8xf32>
    %18 = vector.broadcast %17 : vector<1x8xf32> to vector<8x8xf32>
    %19 = arith.addf %16, %18 : vector<8x8xf32>
    %c0_12 = arith.constant 0 : index
    %c1 = arith.constant 1 : index
    %c0_13 = arith.constant 0 : index
    %c0_14 = arith.constant 0 : index
    %20 = vector.load %arg9[%c0_12, %c1, %c0_13, %c0_14] : memref<1x4x8x8xf32, #tpu.memory_space<vmem>>, vector<1x1x8x8xf32>
    %21 = vector.shape_cast %20 : vector<1x1x8x8xf32> to vector<8x8xf32>
    %22 = vector.shape_cast %19 : vector<8x8xf32> to vector<1x1x8x8xf32>
    tpu.vector_store %arg9[%c0_12, %c1, %c0_13, %c0_14], %22 {strides = array<i32>} : memref<1x4x8x8xf32, #tpu.memory_space<vmem>>, vector<1x1x8x8xf32>,
    %23 = vector.extract_strided_slice %5 {offsets = [0, 64], sizes = [8, 32], strides = [1, 1]} : vector<8x128xf32> to vector<8x32xf32>
    %cst_15 = arith.constant dense<0.000000e+00> : vector<8x8xf32>
    %24 = tpu.matmul %4, %23, %cst_15 {dimension_numbers = #tpu.dot_dimension_numbers<[1], [1], [0], [0], [0, 0, 1, 0], [], []>} : vector<8x32xf32>, vector<8x32xf32>, vector<8x8xf32> -> vector<8x8xf32>
    %25 = vector.extract_strided_slice %6 {offsets = [2, 0], sizes = [1, 8], strides = [1, 1]} : vector<4x8xf32> to vector<1x8xf32>
    %26 = vector.broadcast %25 : vector<1x8xf32> to vector<8x8xf32>
    %27 = arith.addf %24, %26 : vector<8x8xf32>
    %c0_16 = arith.constant 0 : index
    %c2 = arith.constant 2 : index
    %c0_17 = arith.constant 0 : index
    %c0_18 = arith.constant 0 : index
    %28 = vector.load %arg9[%c0_16, %c2, %c0_17, %c0_18] : memref<1x4x8x8xf32, #tpu.memory_space<vmem>>, vector<1x1x8x8xf32>
    %29 = vector.shape_cast %28 : vector<1x1x8x8xf32> to vector<8x8xf32>
    %30 = vector.shape_cast %27 : vector<8x8xf32> to vector<1x1x8x8xf32>
    tpu.vector_store %arg9[%c0_16, %c2, %c0_17, %c0_18], %30 {strides = array<i32>} : memref<1x4x8x8xf32, #tpu.memory_space<vmem>>, vector<1x1x8x8xf32>,
    %31 = vector.extract_strided_slice %5 {offsets = [0, 96], sizes = [8, 32], strides = [1, 1]} : vector<8x128xf32> to vector<8x32xf32>
    %cst_19 = arith.constant dense<0.000000e+00> : vector<8x8xf32>
    %32 = tpu.matmul %4, %31, %cst_19 {dimension_numbers = #tpu.dot_dimension_numbers<[1], [1], [0], [0], [0, 0, 1, 0], [], []>} : vector<8x32xf32>, vector<8x32xf32>, vector<8x8xf32> -> vector<8x8xf32>
    %33 = vector.extract_strided_slice %6 {offsets = [3, 0], sizes = [1, 8], strides = [1, 1]} : vector<4x8xf32> to vector<1x8xf32>
    %34 = vector.broadcast %33 : vector<1x8xf32> to vector<8x8xf32>
    %35 = arith.addf %32, %34 : vector<8x8xf32>
    %c0_20 = arith.constant 0 : index
    %c3 = arith.constant 3 : index
    %c0_21 = arith.constant 0 : index
    %c0_22 = arith.constant 0 : index
    %36 = vector.load %arg9[%c0_20, %c3, %c0_21, %c0_22] : memref<1x4x8x8xf32, #tpu.memory_space<vmem>>, vector<1x1x8x8xf32>
    %37 = vector.shape_cast %36 : vector<1x1x8x8xf32> to vector<8x8xf32>
    %38 = vector.shape_cast %35 : vector<8x8xf32> to vector<1x1x8x8xf32>
    tpu.vector_store %arg9[%c0_20, %c3, %c0_21, %c0_22], %38 {strides = array<i32>} : memref<1x4x8x8xf32, #tpu.memory_space<vmem>>, vector<1x1x8x8xf32>,
    return
  }
  func.func @transform_0(%arg0: i32, %arg1: i32, %arg2: i32) -> (i32, i32, i32) {
    %c0_i32 = arith.constant 0 : i32
    %c0_i32_0 = arith.constant 0 : i32
    return %arg0, %arg1, %c0_i32 : i32, i32, i32
  }
  func.func @transform_1(%arg0: i32, %arg1: i32, %arg2: i32) -> (i32, i32, i32) {
    %c0_i32 = arith.constant 0 : i32
    %c0_i32_0 = arith.constant 0 : i32
    return %arg0, %arg2, %c0_i32 : i32, i32, i32
  }
  func.func @transform_2(%arg0: i32, %arg1: i32, %arg2: i32) -> (i32, i32) {
    %c0_i32 = arith.constant 0 : i32
    %c0_i32_0 = arith.constant 0 : i32
    %c0_i32_1 = arith.constant 0 : i32
    return %c0_i32, %c0_i32_0 : i32, i32
  }
  func.func @transform_3(%arg0: i32, %arg1: i32, %arg2: i32) -> (i32, i32) {
    %c0_i32 = arith.constant 0 : i32
    %c0_i32_0 = arith.constant 0 : i32
    %c0_i32_1 = arith.constant 0 : i32
    return %c0_i32, %c0_i32_0 : i32, i32
  }
  func.func @transform_4(%arg0: i32, %arg1: i32, %arg2: i32) -> (i32, i32) {
    %c0_i32 = arith.constant 0 : i32
    %c0_i32_0 = arith.constant 0 : i32
    %c0_i32_1 = arith.constant 0 : i32
    return %c0_i32, %c0_i32_0 : i32, i32
  }
  func.func @transform_5(%arg0: i32, %arg1: i32, %arg2: i32) -> (i32, i32) {
    %c0_i32 = arith.constant 0 : i32
    %c0_i32_0 = arith.constant 0 : i32
    %c0_i32_1 = arith.constant 0 : i32
    return %c0_i32, %c0_i32_0 : i32, i32
  }
  func.func @transform_6(%arg0: i32, %arg1: i32, %arg2: i32) -> (i32, i32, i32, i32) {
    %c0_i32 = arith.constant 0 : i32
    %c0_i32_0 = arith.constant 0 : i32
    return %arg0, %c0_i32, %arg2, %arg1 : i32, i32, i32, i32
  }
}

</mosaic_0001>

<bundles_post_ra>
// kernel: tpu_custom_call.1
= control target key start
LH: loop header
LB: loop body
LE: loop exit
PB: predicated region body
PF: predicated region fallthrough
CT: control target
= control target key end

     0   :  { %s1678_s0 = inlined_call_operand.hbm [shape: f32[2,8,32], index: 0, kind: input, shape index: {}]   ;;  %s1679_s1 = inlined_call_operand.hbm [shape: f32[2,8,32], index: 1, kind: input, shape index: {}]   ;;  %s1680_s2 = inlined_call_operand.hbm [shape: f32[32,128], index: 2, kind: input, shape index: {}]   ;;  %s1681_s3 = inlined_call_operand.vmem [shape: f32[1,128], index: 3, kind: input, shape index: {}]   ;;  %s1682_s4 = inlined_call_operand.vmem [shape: f32[4,32], index: 4, kind: input, shape index: {}]   ;;  %s1683_s5 = inlined_call_operand.vmem [shape: f32[4,1], index: 5, kind: input, shape index: {}]   ;;  %s1684_s6 = inlined_call_operand.hbm [shape: f32[2,4,8,8], index: 6, kind: output, shape index: {}]  }
   0x1   :  { %1692 = sst [smem:[#allocation19_spill]] %s1680_s2 }
   0x2   :  { %11 = vsyncpa [#allocation5], 0 }
   0x3   :  { %13 = vsyncpa [#allocation5 + $0x1], 0 }
   0x4   :  { %14 = vsyncpa [#allocation8], 0 }
   0x5   :  { %16 = vsyncpa [#allocation8 + $0x1], 0 }
   0x6   :  { %17 = vsyncpa [#allocation6], 0 }
   0x7   :  { %19 = vsyncpa [#allocation6 + $0x1], 0  ;;  %s1396_s21 = smov 0   ;;  %s1398_s22 = smov 0  }
   0x8   :  { %s1400_s23 = smov 0   ;;  %s1402_s24 = smov 0  }
   0x9   :  { %s1404_s25 = smov 0   ;;  %s1406_s26 = smov 0  }
   0xa LB: > { %1693 = sst [smem:[#allocation15_spill]] %s1332_s23  ;;  %s1427_s27 = sadd.s32 4294967295, %s1344_s26   ;;  %s1344_s26 = sphi %s1406_s26, %s25_s26   ;;  %s1340_s25 = sphi %s1404_s25, %s1716_s25   ;;  %s1336_s24 = sphi %s1402_s24, %s1715_s24   ;;  %s1332_s23 = sphi %s1400_s23, %s1714_s23   ;;  %s1328_s22 = sphi %s1398_s22, %s1718_s22   ;;  %s1324_s21 = sphi %s1396_s21, %s1717_s21  }
   0xb   : > { %1694 = sst [smem:[#allocation16_spill]] %s1340_s25  ;;  %s984_s28 = sadd.s32 4294967294, %s1344_s26  }
   0xc   : > { %p66_p0 = scmp.ne.s32.totalorder %s1328_s22, %s1324_s21  ;;  %p1685_p1 = scmp.eq.s32.totalorder %s1427_s27, 0 }
   0xd   : > { %p212_p3 = scmp.eq.s32.totalorder %s984_s28, 1  ;;  %p985_p5 = scmp.ge.s32.totalorder %s1344_s26, 1 }
   0xe   : > { %p1436_p4 = por %p1685_p1, %p66_p0  ;;  %p219_p7 = scmp.lt.s32.totalorder %s1344_s26, 3 }
   0xf   : > { %p1441_p6 = por %p212_p3, %p66_p0  ;;  %s1346_s8 = smov [#allocation9]  }
  0x10   : > { %s1695_s29 = scalar_select %p1436_p4, 1, 0 }
  0x11   : > { %s1696_s30 = scalar_select %p1441_p6, 1, 0 }
  0x12   : > { %p1446_p8 = pnand %p985_p5, %p219_p7  ;;  %s231_s9 = sshll.u32 %s1346_s8, 4  ;;  %s232_s9 = int_to_ptr.vmem [resolvable:$true] %s231_s9 }
  0x13   : > { %s44_s11 = sadd.s32 1, %s1340_s25  ;;  %s1699_s2 = sld [smem:[#allocation19_spill]] }
  0x14   : > { %s1697_s7 = scalar_select %p1446_p8, 1, 0 }
  0x15   : > { %p1085_p9 = pneg %p1446_p8 }
  0x17   : > { %p1455_p11 = pnand %p1085_p9, %p1685_p1 }
  0x19   : > { %s1166_s14 = scalar_lea.hbm %s1699_s2, 512  ;;  %p1168_p13 = pneg %p1455_p11 }
  0x1a   : > { %p1167_p12 = scmp.ne.s32.totalorder %s1699_s2, %s1166_s14  ;;  %p1173_p5 = scmp.lt.u32.totalorder %s1166_s14, %s1699_s2 }
  0x1c   : > { %p1169_p0 = pnand %p1168_p13, %p1167_p12 }
  0x1e   : > { %p1170_p3 = pneg %p1169_p0 }
  0x20   : > { %p1175_p7 = pnand %p1173_p5, %p1170_p3 }
  0x22   : > { %1178 = shalt.err (!%p1175_p7)
}
  0x23   : > { %s1179_s19 = scalar_lea.vmem %s232_s9, 512  ;;  %p1187_p2 = scmp.lt.s32.totalorder %s232_s9, %s232_s9 }
  0x24   : > { %p1180_p9 = scmp.ne.s32.totalorder %s232_s9, %s1179_s19  ;;  %p1188_p6 = scmp.lt.s32.totalorder %s1179_s19, %s1179_s19 }
  0x26   : > { %p1182_p10 = pnand %p1180_p9, %p1168_p13  ;;  %p1189_p4 = por %p1188_p6, %p1187_p2 }
  0x28   : > { %p1183_p1 = pneg %p1182_p10 }
  0x2a   : > { %p1190_p8 = pnand %p1189_p4, %p1183_p1 }
  0x2c   : > { %1193 = shalt.err (!%p1190_p8)
}
  0x2d   : > { %s1347_s20 = smov 128   ;;  %s1348_s28 = smov 8  }
  0x2e   : > { %1088 = dma.hbm_to_vmem [thread:$0]  (!%p1455_p11), %s1699_s2, 512, %s232_s9, [#allocation8], %s1347_s20, %s1347_s20, %s1348_s28  }
  0x2f   : > { %p46_p1 = scmp.ge.s32.totalorder %s44_s11, 2  ;;  %s53_s13 = sadd.s32 1, %s1332_s23 }
  0x30   : > { %p60_p2 = scmp.ne.s32.totalorder %s1332_s23, %s1328_s22  ;;  %p61_p4 = scmp.eq.s32.totalorder %s1344_s26, 0 }
  0x31   : > { %s1720_s11 = smov (%p46_p1, %s44_s11), 0  ;;  %p1702_p8 = scmp.eq.s32.totalorder %s1427_s27, 1 }
  0x32   : > { %1700 = sst [smem:[#allocation17_spill]] %s1720_s11  ;;  %p1482_p6 = por %p61_p4, %p60_p2 }
  0x33   : > { %p1488_p10 = por %p1702_p8, %p60_p2  ;;  %s48_s15 = ssub.s32 %s1340_s25, %s1720_s11 }
  0x34   : > { %p1101_p11 = scmp.lt.s32.totalorder %s1344_s26, 2  ;;  %p51_p12 = scmp.eq.s32.totalorder %s48_s15, 0 }
  0x35   : > { %s1703_s10 = scalar_select %p1488_p10, 1, 0 }
  0x36   : > { %s254_s9 = sand.u32 1, %s1332_s23   ;;  %s989_s18 = sshll.u32 %s1340_s25, 7 }
  0x37   : > { %s1496_s16 = sshll.u32 %s254_s9, 3  ;;  %s1505_s28 = scalar_lea.hbm %s1678_s0, %s989_s18 }
  0x38   : > { %s1499_s17 = scalar_select %p51_p12, %s1332_s23, %s53_s13  }
  0x39   : > { %s258_s8 = scalar_lea.vmem [#allocation4], %s1496_s16  ;;  %p1512_p13 = pnand %p1101_p11, %p1482_p6 }
  0x3a   : > { %1704 = sst [smem:[#allocation18_spill]] %s1499_s17  ;;  %s266_s12 = sshll.u32 %s258_s8, 4  ;;  %s1508_s12 = int_to_ptr.vmem [resolvable:$true] %s266_s12 }
  0x3b   : > { %s1519_s19 = scalar_lea.hbm %s1679_s1, %s989_s18  ;;  %s273_s20 = sand.u32 1, %s1344_s26  }
  0x3c   : > { %s255_s11 = scalar_lea.sflag [#allocation5], %s254_s9  ;;  %s1194_s25 = scalar_lea.hbm %s1505_s28, 128 }
  0x3d   : > { %p1195_p0 = scmp.ne.s32.totalorder %s1505_s28, %s1194_s25  ;;  %p1196_p3 = pneg %p1512_p13 }
  0x3e   : > { %s1199_s17 = scalar_lea.hbm %s1678_s0, 256  ;;  %p1200_p9 = scmp.lt.u32.totalorder %s1505_s28, %s1678_s0 }
  0x3f   : > { %p1197_p5 = pnand %p1196_p3, %p1195_p0  ;;  %p1201_p1 = scmp.lt.u32.totalorder %s1199_s17, %s1194_s25 }
  0x40   : > { %p1203_p4 = scmp.lt.u32.totalorder %s1194_s25, %s1505_s28 }
  0x41   : > { %p1198_p7 = pneg %p1197_p5  ;;  %p1202_p2 = por %p1201_p1, %p1200_p9 }
  0x43   : > { %p1204_p6 = por %p1203_p4, %p1202_p2 }
  0x45   : > { %p1205_p8 = pnand %p1204_p6, %p1198_p7 }
  0x47   : > { %1208 = shalt.err (!%p1205_p8)
}
  0x48   : > { %s1209_s9 = scalar_lea.vmem %s1508_s12, 128  ;;  %s1349_s18 = smov [#allocation4]  }
  0x49   : > { %p1210_p11 = scmp.ne.s32.totalorder %s1508_s12, %s1209_s9  ;;  %s1214_s13 = sshll.u32 %s1349_s18, 4  ;;  %s1215_s13 = int_to_ptr.vmem [resolvable:$false] %s1214_s13 }
  0x4a   : > { %s1216_s23 = scalar_lea.vmem %s1215_s13, 256  ;;  %p1217_p5 = scmp.lt.s32.totalorder %s1508_s12, %s1215_s13 }
  0x4b   : > { %p1212_p12 = pnand %p1210_p11, %p1196_p3  ;;  %p1218_p9 = scmp.lt.s32.totalorder %s1216_s23, %s1209_s9 }
  0x4d   : > { %p1213_p0 = pneg %p1212_p12  ;;  %p1219_p1 = por %p1218_p9, %p1217_p5 }
  0x4f   : > { %p1220_p2 = pnand %p1219_p1, %p1213_p0 }
  0x51   : > { %1223 = shalt.err (!%p1220_p2)
}
  0x52   : > { %1092 = dma.hbm_to_vmem [thread:$0]  (!%p1512_p13), %s1505_s28, 128, %s1508_s12, %s255_s11  }
  0x53   : > { %s277_s25 = scalar_lea.vmem [#allocation7], %s1496_s16  ;;  %s274_s14 = scalar_lea.sflag [#allocation8], %s273_s20 }
  0x54   : > { %s285_s17 = sshll.u32 %s277_s25, 4  ;;  %s1224_s8 = scalar_lea.hbm %s1519_s19, 128  ;;  %s286_s17 = int_to_ptr.vmem [resolvable:$true] %s285_s17 }
  0x55   : > { %p1225_p7 = scmp.ne.s32.totalorder %s1519_s19, %s1224_s8  ;;  %s1229_s18 = scalar_lea.hbm %s1679_s1, 256 }
  0x56   : > { %p1230_p8 = scmp.lt.u32.totalorder %s1519_s19, %s1679_s1  ;;  %p1231_p11 = scmp.lt.u32.totalorder %s1229_s18, %s1224_s8 }
  0x57   : > { %p1227_p4 = pnand %p1225_p7, %p1196_p3  ;;  %p1233_p0 = scmp.lt.u32.totalorder %s1224_s8, %s1519_s19 }
  0x58   : > { %p1232_p12 = por %p1231_p11, %p1230_p8 }
  0x59   : > { %p1228_p6 = pneg %p1227_p4 }
  0x5a   : > { %p1234_p5 = por %p1233_p0, %p1232_p12 }
  0x5c   : > { %p1235_p9 = pnand %p1234_p5, %p1228_p6 }
  0x5e   : > { %1238 = shalt.err (!%p1235_p9)
}
  0x5f   : > { %s1239_s11 = scalar_lea.vmem %s286_s17, 128  ;;  %s1350_s16 = smov [#allocation7]  }
  0x60   : > { %p1240_p1 = scmp.ne.s32.totalorder %s286_s17, %s1239_s11  ;;  %s1244_s28 = sshll.u32 %s1350_s16, 4  ;;  %s1245_s28 = int_to_ptr.vmem [resolvable:$false] %s1244_s28 }
  0x61   : > { %s1246_s12 = scalar_lea.vmem %s1245_s28, 256  ;;  %p1247_p4 = scmp.lt.s32.totalorder %s286_s17, %s1245_s28 }
  0x62   : > { %p1242_p2 = pnand %p1240_p1, %p1196_p3  ;;  %p1248_p10 = scmp.lt.s32.totalorder %s1246_s12, %s1239_s11 }
  0x64   : > { %p1243_p7 = pneg %p1242_p2  ;;  %p1249_p8 = por %p1248_p10, %p1247_p4 }
  0x66   : > { %p1250_p11 = pnand %p1249_p8, %p1243_p7 }
  0x68   : > { %1253 = shalt.err (!%p1250_p11)
}
  0x69   : > { %1095 = dma.hbm_to_vmem [thread:$0]  (!%p1512_p13), %s1519_s19, 128, %s286_s17, %s274_s14  }
  0x6a   : > { %p1706_p6 = scmp.ne.s32.totalorder %s1697_s7, 0 }
  0x6b   : > { %s1572_s20 = sand.u32 (!%p1706_p6), 1, %s1328_s22   ;;  %p1707_p3 = scmp.ne.s32.totalorder (!%p1706_p6), %s1695_s29, 0 }
  0x6c   : > { %294 = sbr.rel (%p1706_p6) target bundleno = 697 (0x2b9), region = 44  ;;  %s993_s25 = sshll.u32 (!%p1706_p6), %s1572_s20, 3 }
  0x6d   : > { %s297_s8 = scalar_lea.sflag (!%p1706_p6), [#allocation5], %s1572_s20  ;;  %s300_s2 = scalar_lea.vmem (!%p1706_p6), [#allocation4], %s993_s25 }
  0x73   : > { %1307 = dma.done.wait (%p1707_p3), %s297_s8, 128  }
  0x74   : > { %1309 = vsyncadd (%p1707_p3), %s297_s8, 4294967168  ;;  %s305_s15 = sand.u32 1, %s1427_s27   ;;  %s1581_s7 = scalar_lea.vmem [#allocation7], %s993_s25 }
  0x75   : > { %s306_s19 = scalar_lea.sflag [#allocation8], %s305_s15 }
  0x76   : > { %1311 = dma.done.wait (%p1707_p3), %s306_s19, 128  }
  0x77   : > { %1313 = vsyncadd (%p1707_p3), %s306_s19, 4294967168  ;;  %p1708_p10 = scmp.eq.s32.totalorder %s1427_s27, 0 }
  0x79   : > { %1315 = dma.done.wait (%p1708_p10), [#allocation8], 512   ;;  %p1709_p13 = pmov %p1708_p10 }
  0x7a   : > { %v1351_v0 = vmov 0.0|0.0   ;;  %vm1352_vm0 = vmmov 0   ;;  %v1353_v1 = vmov 0.0   ;;  %v352_v2 = vld [vmem:[#allocation9] sm:$0xff]  ;;  %v353_v3 = vld [vmem:[#allocation9 + $0x8] sm:$0xff]  ;;  %v354_v4 = vld [vmem:[#allocation9 + $0x10] sm:$0xff]  ;;  %v523_v24 = vlaneseq }
  0x7b   : > { %1317 = vsyncadd (%p1709_p13), [#allocation8], 4294966784  ;;  %1069 = vmatprep.subr.bf16.mxu0 %v1351_v0  ;;  %1041 = vmatprep.mubr.msk.f32.mxu0 %vm1352_vm0, %v1353_v1  ;;  %v1070_v5 = vpack.c.bf16 %v353_v3, %v352_v2  ;;  %v355_v6 = vld [vmem:[#allocation9 + $0x18] sm:$0xff]  ;;  %v351_v7 = vld [vmem:[%s300_s2] sm:$0xff]  ;;  %vm363_vm1 = vcmask 261120   ;;  %v1354_v11 = vmov 0  }
  0x7c   : > { %1044 = vmatprep.subr.mxu1 %v1353_v1  ;;  %1046 = vmatprep.mubr.msk.f32.mxu1 %vm1352_vm0, %v1353_v1  ;;  %v1073_v8 = vpack.c.bf16 %v355_v6, %v354_v4  ;;  %v438_v9 = vld [vmem:[%s1682_s4] sm:$0xf]  ;;  %s1355_s9 = smov 32   ;;  %s1356_s18 = smov 96   ;;  %vm518_vm2 = vcmask 60416   ;;  %v524_v25 = vshrl.u32 %v523_v24, 7 }
  0x7d   : > { %1045 = vmatpush3.xpose.msk.msra.mxu1 %vm363_vm1, %v351_v7  ;;  %1071 = vmatpush3.bf16.msra.mxu0 %v1070_v5  ;;  %v997_v10 = vld [vmem:[%s1681_s3] ss:$0 sm:$0xff]  ;;  %s1357_s11 = smov 64   ;;  %s996_s16 = sshll.u32 %s1572_s20, 5  ;;  %vm604_vm3 = vcmask 64512  }
  0x7e   : > { %1049 = vmatprep.subr.mxu1 %v1353_v1  ;;  %1072 = vmatprep.subr.bf16.mxu0 %v1351_v0  ;;  %v520_v15 = vld [vmem:[%s1581_s7] sm:$0xff]  ;;  %v525_v26 = vsub.s32 0, %v524_v25  ;;  %s346_s28 = scalar_lea.vmem [#allocation10], %s996_s16  ;;  %v608_v32 = vsub.s32 1, %v524_v25  ;;  %v688_v34 = vsub.s32 2, %v524_v25  ;;  %v768_v35 = vsub.s32 3, %v524_v25 }
  0x7f   : > { %1164 = vset.pattern.permute.xlu1 %v1354_v11  ;;  %1165 = vset.pattern.permute.xlu0 %v1354_v11  ;;  %v439_v16 = vld [vmem:[%s1683_s5] sm:$0xf]  ;;  %s862_s12 = sshll.u32 %s346_s28, 4  ;;  %s1017_s25 = sshll.u32 %s1336_s24, 9  ;;  %s1621_s12 = int_to_ptr.vmem [resolvable:$true] %s862_s12 }
  0x80   : > { %1047 = vmatmul.mubr.msk.f32.vlgmr.msra.gmra.mrb[0].mxu1 %vm363_vm1, %v438_v9  ;;  %s1627_s15 = scalar_lea.hbm %s1684_s6, %s1017_s25  ;;  %s847_s24 = scalar_lea.sflag [#allocation6], %s1572_s20 }
  0x81   : > { %1074 = vmatpush3.bf16.msra.mxu0 %v1073_v8  ;;  %1051 = vmatprep.mubr.msk.f32.mxu1 %vm1352_vm0, %v1353_v1  ;;  %s1254_s19 = scalar_lea.vmem %s1621_s12, 512  ;;  %p1710_p0 = scmp.ne.s32.totalorder %s1703_s10, 0 }
  0x82   : > { %1054 = vmatprep.subr.mxu0 %v1353_v1  ;;  %p1255_p12 = scmp.ne.s32.totalorder %s1621_s12, %s1254_s19  ;;  %s1358_s7 = smov [#allocation10]  }
  0x83   : > { %s1258_s27 = sshll.u32 %s1358_s7, 4  ;;  %s1259_s27 = int_to_ptr.vmem [resolvable:$false] %s1258_s27 }
  0x84   : > { %1042 = vmatmul.mubr.msk.f32.vlgmr.msra.gmra.mrb[0].mxu0 %vm363_vm1, %v351_v7  ;;  %p1256_p5 = pnand %p1255_p12, %p1710_p0  ;;  %s1260_s29 = scalar_lea.vmem %s1259_s27, 1024 }
  0x85   : > { %1056 = vmatprep.mubr.msk.f32.mxu0 %vm1352_vm0, %v1353_v1  ;;  %p1261_p1 = scmp.lt.s32.totalorder %s1621_s12, %s1259_s27  ;;  %p1262_p2 = scmp.lt.s32.totalorder %s1260_s29, %s1254_s19 }
  0x86   : > { %p1257_p9 = pneg %p1256_p5 }
  0x87   : > { %p1263_p7 = por %p1262_p2, %p1261_p1 }
  0x89   : > { %p1264_p4 = pnand %p1263_p7, %p1257_p9 }
 0x153   : > { %v514_v17 = vpop.f32.mrb[0].mxu1 }
 0x154   : > { %v1048_v18 = vpop.f32.mrb[1].mxu1 }
 0x157   : > { %v433_v12 = vpop.f32.mrb[0].mxu0 }
 0x158   : > { %v434_v13 = vadd.f32 %v997_v10, %v433_v12  ;;  %v1043_v14 = vpop.f32.mrb[1].mxu0 }
 0x15a   : > { %770 = vrot.lane.b32.xlu1 %v434_v13, %s1355_s9  ;;  %610 = vrot.lane.b32.xlu0 %v434_v13, %s1356_s18 }
 0x15b   : > { %1050 = vmatpush3.xpose.msk.msra.mxu1 %vm363_vm1, %v434_v13 }
 0x15c   : > { %1059 = vmatprep.subr.mxu1 %v1353_v1 }
 0x15e   : > { %690 = vrot.lane.b32.xlu0 %v434_v13, %s1357_s11  ;;  %1052 = vmatmul.mubr.msk.f32.vlgmr.msra.gmra.mrb[2].mxu1 %vm363_vm1, %v520_v15 }
 0x15f   : > { %1061 = vmatprep.mubr.msk.f32.mxu1 %vm1352_vm0, %v1353_v1  ;;  %442 = vperm.xlu1 %1164, %v439_v16  }
 0x1cc   : > { %v611_v19 = vpop.permute.xlu0 %610  ;;  %v771_v20 = vpop.permute.xlu1 %770 }
 0x1cd   : > { %1055 = vmatpush3.xpose.msk.msra.mxu0 %vm363_vm1, %v611_v19 }
 0x1ce   : > { %1064 = vmatprep.subr.mxu0 %v1353_v1 }
 0x1d0   : > { %1057 = vmatmul.mubr.msk.f32.vlgmr.msra.gmra.mrb[2].mxu0 %vm363_vm1, %v520_v15  ;;  %v691_v21 = vpop.permute.xlu0 %690 }
 0x1d1   : > { %1060 = vmatpush3.xpose.msk.msra.mxu1 %vm363_vm1, %v691_v21  ;;  %1065 = vmatpush3.xpose.msk.msra.mxu0 %vm363_vm1, %v771_v20 }
 0x1d2   : > { %1066 = vmatprep.mubr.msk.f32.mxu0 %vm1352_vm0, %v1353_v1 }
 0x1d4   : > { %1062 = vmatmul.mubr.msk.f32.vlgmr.msra.gmra.mrb[4].mxu1 %vm363_vm1, %v520_v15  ;;  %1067 = vmatmul.mubr.msk.f32.vlgmr.msra.gmra.mrb[4].mxu0 %vm363_vm1, %v520_v15 }
 0x1de   : > { %v443_v22 = vpop.permute.xlu1 %442 }
 0x1df   : > { %v515_v23 = vadd.f32 %v514_v17, %v443_v22 }
 0x1e1   : > { %519 = vst.msk [vmem:[#allocation3] sm:$0xf] %vm518_vm2, %v515_v23 }
 0x1e8   : > { %v522_v27 = vld [vmem:[#allocation3] sm:$0xf] }
 0x1e9   : > { %v526_v28 = vrot.slane %v522_v27, %v525_v26  ;;  %v609_v33 = vrot.slane %v522_v27, %v608_v32  ;;  %v689_v39 = vrot.slane %v522_v27, %v688_v34  ;;  %v769_v40 = vrot.slane %v522_v27, %v768_v35 }
 0x231   : > { %v600_v29 = vpop.f32.mrb[2].mxu1 }
 0x232   : > { %v601_v30 = vadd.f32 %v600_v29, %v526_v28  ;;  %v1053_v31 = vpop.f32.mrb[3].mxu1 }
 0x234   : > { %605 = vst.msk [vmem:[%s346_s28] sm:$0xff] %vm604_vm3, %v601_v30 }
 0x2a3   : > { %v680_v36 = vpop.f32.mrb[2].mxu0 }
 0x2a4   : > { %v681_v37 = vadd.f32 %v680_v36, %v609_v33  ;;  %v1058_v38 = vpop.f32.mrb[3].mxu0 }
 0x2a6   : > { %1005 = vst.msk [vmem:[%s346_s28 + $0x8] sm:$0xff] %vm604_vm3, %v681_v37 }
 0x2a7   : > { %v760_v41 = vpop.f32.mrb[4].mxu1  ;;  %v840_v42 = vpop.f32.mrb[4].mxu0 }
 0x2a8   : > { %v761_v43 = vadd.f32 %v760_v41, %v689_v39  ;;  %v841_v44 = vadd.f32 %v840_v42, %v769_v40  ;;  %v1063_v45 = vpop.f32.mrb[5].mxu1  ;;  %v1068_v46 = vpop.f32.mrb[5].mxu0 }
 0x2aa   : > { %1008 = vst.msk [vmem:[%s346_s28 + $0x10] sm:$0xff] %vm604_vm3, %v761_v43  ;;  %1011 = vst.msk [vmem:[%s346_s28 + $0x18] sm:$0xff] %vm604_vm3, %v841_v44 }
 0x2ab   : > { %1267 = shalt.err (!%p1264_p4)
}
 0x2ac   : > { %s1268_s17 = scalar_lea.hbm %s1627_s15, 512  ;;  %s1272_s18 = scalar_lea.hbm %s1684_s6, 1024 }
 0x2ad   : > { %p1269_p8 = scmp.ne.s32.totalorder %s1627_s15, %s1268_s17  ;;  %p1273_p3 = scmp.lt.u32.totalorder %s1627_s15, %s1684_s6 }
 0x2ae   : > { %p1274_p10 = scmp.lt.u32.totalorder %s1272_s18, %s1268_s17  ;;  %p1276_p12 = scmp.lt.u32.totalorder %s1268_s17, %s1627_s15 }
 0x2af   : > { %p1270_p11 = pnand %p1269_p8, %p1710_p0 }
 0x2b0   : > { %p1275_p13 = por %p1274_p10, %p1273_p3 }
 0x2b1   : > { %p1271_p6 = pneg %p1270_p11 }
 0x2b2   : > { %p1277_p5 = por %p1276_p12, %p1275_p13 }
 0x2b4   : > { %p1278_p9 = pnand %p1277_p5, %p1271_p6 }
 0x2b6   : > { %1281 = shalt.err (!%p1278_p9)
}
 0x2b7   : > { %s1359_s11 = smov 128   ;;  %s1360_s16 = smov 8  }
 0x2b8   : > { %1083 = dma.vmem_to_hbm [thread:$0]  (%p1710_p0), %s1621_s12, 512, %s1627_s15, %s847_s24, %s1359_s11, %s1359_s11, %s1360_s16  }
 0x2b9 PF: > { %s877_s28 = sand.u32 1, %s1324_s21   ;;  %p1711_p1 = scmp.ne.s32.totalorder %s1696_s30, 0 }
 0x2ba   : > { %p1712_p2 = scmp.ge.s32.totalorder %s1344_s26, 2  ;;  %s878_s25 = scalar_lea.sflag [#allocation6], %s877_s28 }
 0x2bc   : > { %p1097_p7 = pnand %p1712_p2, %p1711_p1 }
 0x2be   : > { %1319 = dma.done.wait (!%p1097_p7), %s878_s25, 512  }
 0x2bf   : > { %1321 = vsyncadd (!%p1097_p7), %s878_s25, 4294966784  ;;  %s25_s26 = sadd.s32 1, %s1344_s26   ;;  %s1713_s8 = sld [smem:[#allocation15_spill]] }
 0x2c0   : > { %p22_p4 = scmp.ge.s32.totalorder %s25_s26, 4   ;;  %s1714_s23 = sld [smem:[#allocation18_spill]] }
 0x2c1   : > { %s1715_s24 = sld [smem:[#allocation16_spill]]  ;;  %s1716_s25 = sld [smem:[#allocation17_spill]] }
 0x2c2   : > { %s1717_s21 = smov %s1328_s22  ;;  %24 = sbr.rel (!%p22_p4) target bundleno = 10 (0xa), region = 113 }
 0x2c5   : > { %s1718_s22 = smov %s1713_s8 }
 0x2c9   :  { %883 = vsyncpa [#allocation5], 1 }
 0x2ca   :  { %885 = vsyncpa [#allocation5 + $0x1], 1 }
 0x2cb   :  { %886 = vsyncpa [#allocation8], 1 }
 0x2cc   :  { %888 = vsyncpa [#allocation8 + $0x1], 1 }
 0x2cd   :  { %889 = vsyncpa [#allocation6], 1 }
 0x2ce   :  { %891 = vsyncpa [#allocation6 + $0x1], 1 }

</bundles_post_ra>
